<compile_context>
chip_gen: v6e
topology: v6e:2x2x1
jax: 0.10.0
libtpu: 0.0.40
codegen_flags: <defaults>
</compile_context>

<pallas_src>
import functools

import jax
import jax.numpy as jnp
from jax.experimental import pallas as pl
from jax.experimental.pallas import tpu as pltpu

# ---- Module hyperparameters (defaults of DilatedConv1dBlock) -----------------
K = 5                                       # kernel_size
MAX_DILATION = 3
NUM_BRANCHES = MAX_DILATION + 1
MAX_SHIFT = (K - 1) * (2 ** MAX_DILATION)   # 32: largest backward reach of any tap


# ---- Exact GELU (erf via Abramowitz-Stegun 7.1.26, |err| < 1.5e-7) -----------
# TODO(synk): once measured VALU-bound, switch to tanh-GELU (moves work to the
# idle EUP slot) behind a tolerance gate — it differs from exact erf-GELU by ~3e-4.
def _erf(x):
    a1, a2, a3, a4, a5 = 0.254829592, -0.284496736, 1.421413741, -1.453152027, 1.061405429
    p = 0.3275911
    sgn = jnp.where(x >= 0.0, 1.0, -1.0)
    ax = jnp.abs(x)
    t = 1.0 / (1.0 + p * ax)
    poly = ((((a5 * t + a4) * t + a3) * t + a2) * t + a1) * t
    return sgn * (1.0 - poly * jnp.exp(-ax * ax))


def _gelu_exact(x):
    return 0.5 * x * (1.0 + _erf(x * 0.7071067811865475))


# ---- Pallas kernel ------------------------------------------------------------
def dilated_block_kernel(x_ref, w_ref, b_ref, w1_ref, b1_ref, o_ref,
                         win_ref, hist_ref, *,
                         l_tile, conv_out, multi_tile, compute_dtype):
    # x_ref   : (1, l_tile, C_in)                 current L-tile of one batch element
    # w_ref   : (NUM_BRANCHES, K*C_in, conv_out)  folded per-branch conv weights
    # b_ref   : (NUM_BRANCHES, 1, conv_out)       per-branch conv bias
    # w1_ref  : (C_out, C_out)                    1x1 inception weight (in, out)
    # b1_ref  : (1, C_out)                        1x1 inception bias
    # o_ref   : (1, l_tile, C_out)
    # win_ref : (MAX_SHIFT + l_tile, C_in) VMEM scratch — [halo | current tile]
    # hist_ref: (MAX_SHIFT, C_in)          VMEM scratch — last rows of previous tile,
    #                                      carried across the (sequential) l axis.
    c_in = x_ref.shape[-1]
    c_out = NUM_BRANCHES * conv_out

    # ---- Assemble the causal window: original rows [t0 - MAX_SHIFT, t0 + l_tile) ----
    if multi_tile:
        l = pl.program_id(1)

        @pl.when(l == 0)
        def _():  # start of a new batch element: history is zeros (causal left pad)
            win_ref[pl.ds(0, MAX_SHIFT), :] = jnp.zeros((MAX_SHIFT, c_in), win_ref.dtype)

        @pl.when(l > 0)
        def _():  # history = last MAX_SHIFT rows of the previous L-tile
            win_ref[pl.ds(0, MAX_SHIFT), :] = hist_ref[...]
    else:
        win_ref[pl.ds(0, MAX_SHIFT), :] = jnp.zeros((MAX_SHIFT, c_in), win_ref.dtype)

    win_ref[pl.ds(MAX_SHIFT, l_tile), :] = x_ref[0]

    if multi_tile:
        # Carry the halo for the next L-tile (requires l_tile >= MAX_SHIFT).
        hist_ref[...] = x_ref[0, pl.ds(l_tile - MAX_SHIFT, MAX_SHIFT), :]

    # ---- Per-branch folded conv (single MXU matmul), GELU, fused 1x1 slice ----
    out_acc = jnp.zeros((l_tile, c_out), jnp.float32)
    for d in range(NUM_BRANCHES):
        dil = 2 ** d
        # Gather the K shifted windows at STATIC offsets in the window scratch and
        # stack them on the channel axis -> (l_tile, K*C_in).
        taps = []
        for k in range(K):
            shift = (K - 1 - k) * dil       # causal: out[t] += w[k] * x[t - shift]
            off = MAX_SHIFT - shift         # static offset into win_ref
            taps.append(win_ref[pl.ds(off, l_tile), :])
        x_stk = jnp.concatenate(taps, axis=-1)

        # One MXU matmul per branch, contraction depth K*C_in; f32 accumulation.
        h = jnp.dot(x_stk.astype(compute_dtype),
                    w_ref[d].astype(compute_dtype),
                    preferred_element_type=jnp.float32)
        h = _gelu_exact(h + b_ref[d])       # (l_tile, conv_out), conv_gelu=True

        # Fold this branch straight through its slice of the 1x1 conv weight
        # (replaces channel concat + separate 1x1 matmul).
        w1_d = w1_ref[d * conv_out:(d + 1) * conv_out, :]     # (conv_out, C_out)
        out_acc = out_acc + jnp.dot(h.astype(compute_dtype),
                                    w1_d.astype(compute_dtype),
                                    preferred_element_type=jnp.float32)

    o_ref[0, :, :] = (out_acc + b1_ref[...]).astype(o_ref.dtype)


def _pick_l_tile(L, target=512):
    """Largest multiple of 8 in [MAX_SHIFT, target] dividing L, else L (single tile)."""
    if L <= target:
        return L
    t = target - (target % 8)
    while t >= MAX_SHIFT:
        if L % t == 0:
            return t
        t -= 8
    return L


def dilated_conv1d_block(x, w_fold, b_fold, w1, b1, *, l_tile=None,
                         compute_dtype=jnp.float32):
    """x: (B, L, C_in).
    w_fold: (NUM_BRANCHES, K*C_in, conv_out) — row index = k*C_in + c_in.
    b_fold: (NUM_BRANCHES, 1, conv_out).  w1: (C_out, C_out) input-major.  b1: (1, C_out).
    Returns (B, L, C_out).  Set compute_dtype=jnp.bfloat16 on v6e/v7x for ~2x MXU
    throughput (re-validate tolerance)."""
    B, L, C_in = x.shape
    conv_out = w_fold.shape[-1]
    C_out = NUM_BRANCHES * conv_out

    if l_tile is None:
        l_tile = _pick_l_tile(L)
    assert L % l_tile == 0, "L must be divisible by l_tile"
    num_l = L // l_tile
    multi_tile = num_l > 1
    if multi_tile:
        assert l_tile % 8 == 0, "l_tile must be a multiple of 8 when tiling L"
        assert l_tile >= MAX_SHIFT, f"l_tile must be >= {MAX_SHIFT} when tiling L"

    kernel = functools.partial(dilated_block_kernel, l_tile=l_tile,
                               conv_out=conv_out, multi_tile=multi_tile,
                               compute_dtype=compute_dtype)
    return pl.pallas_call(
        kernel,
        out_shape=jax.ShapeDtypeStruct((B, L, C_out), x.dtype),
        grid_spec=pltpu.PrefetchScalarGridSpec(
            num_scalar_prefetch=0,
            grid=(B, num_l),
            in_specs=[
                pl.BlockSpec((1, l_tile, C_in), lambda b, l: (b, l, 0)),
                pl.BlockSpec((NUM_BRANCHES, K * C_in, conv_out), lambda b, l: (0, 0, 0)),
                pl.BlockSpec((NUM_BRANCHES, 1, conv_out), lambda b, l: (0, 0, 0)),
                pl.BlockSpec((C_out, C_out), lambda b, l: (0, 0)),
                pl.BlockSpec((1, C_out), lambda b, l: (0, 0)),
            ],
            out_specs=pl.BlockSpec((1, l_tile, C_out), lambda b, l: (b, l, 0)),
            scratch_shapes=[
                pltpu.VMEM((MAX_SHIFT + l_tile, C_in), x.dtype),   # window
                pltpu.VMEM((MAX_SHIFT, C_in), x.dtype),            # carried halo
            ]),
        compiler_params=pltpu.CompilerParams(
            # l carries the halo scratch -> must stay sequential ("arbitrary");
            # b is independent -> "parallel" (megacore / 2-TC sharding).
            dimension_semantics=("parallel", "arbitrary")),
    )(x, w_fold, b_fold, w1, b1)


# ---- Plain-JAX reference (mirrors the PyTorch forward) -------------------------
def reference(x, w_branch_torch, b_branch, w1_torch, b1):
    # x: (B, L, C_in); w_branch_torch: (D, conv_out, C_in, K) (torch OIH layout)
    B, L, _ = x.shape
    xc = jnp.transpose(x, (0, 2, 1))                  # (B, C_in, L)
    outs = []
    for d in range(NUM_BRANCHES):
        dil = 2 ** d
        pad = (K - 1) * dil
        y = jax.lax.conv_general_dilated(
            xc, w_branch_torch[d], window_strides=(1,), padding=[(pad, pad)],
            rhs_dilation=(dil,), dimension_numbers=("NCH", "OIH", "NCH"))
        y = y + b_branch[d][None, :, None]
        y = jax.nn.gelu(y, approximate=False)[:, :, :L]
        outs.append(y)
    y = jnp.concatenate(outs, axis=1)                 # (B, C_out, L)
    out = jnp.einsum("oi,bil->bol", w1_torch, y) + b1[None, :, None]
    return jnp.transpose(out, (0, 2, 1))              # (B, L, C_out)


def _make_params(key, C_in, C_out):
    conv_out = C_out // NUM_BRANCHES
    k2, k3, k4, k5 = jax.random.split(key, 4)
    w_branch_torch = 0.2 * jax.random.normal(
        k2, (NUM_BRANCHES, conv_out, C_in, K), jnp.float32)
    b_branch = 0.1 * jax.random.normal(k3, (NUM_BRANCHES, conv_out), jnp.float32)
    w1_torch = 0.2 * jax.random.normal(k4, (C_out, C_out), jnp.float32)  # Conv1d k=1 (O, I)
    b1 = 0.1 * jax.random.normal(k5, (C_out,), jnp.float32)

    # Fold per-branch conv weight (conv_out, C_in, K) -> (K*C_in, conv_out):
    # row index = k*C_in + c_in, matching the in-kernel tap stacking order.
    w_fold = jnp.transpose(w_branch_torch, (0, 3, 2, 1)).reshape(
        NUM_BRANCHES, K * C_in, conv_out)
    b_fold = b_branch.reshape(NUM_BRANCHES, 1, conv_out)
    w1 = w1_torch.T                                   # (in, out)
    b1_k = b1.reshape(1, C_out)
    return (w_branch_torch, b_branch, w1_torch, b1), (w_fold, b_fold, w1, b1_k)


def _check(x, torch_params, kernel_params, l_tile):
    w_branch_torch, b_branch, w1_torch, b1 = torch_params
    w_fold, b_fold, w1, b1_k = kernel_params
    out = dilated_conv1d_block(x, w_fold, b_fold, w1, b1_k, l_tile=l_tile)
    out = jax.block_until_ready(out)
    ref = reference(x, w_branch_torch, b_branch, w1_torch, b1)
    assert out.shape == ref.shape
    max_err = float(jnp.max(jnp.abs(out - ref)))
    assert jnp.allclose(out, ref, atol=1e-4, rtol=1e-4), f"max_err={max_err}"


if __name__ == "__main__":
    C_in, C_out = 4, 8
    key = jax.random.PRNGKey(0)
    kx, kx2, kp = jax.random.split(key, 3)
    torch_params, kernel_params = _make_params(kp, C_in, C_out)

    # 1) Small shape (single L-tile path).
    x_small = jax.random.normal(kx, (2, 16, C_in), jnp.float32)
    _check(x_small, torch_params, kernel_params, l_tile=None)

    # 2) Longer sequence exercising the tiled-L path with the carried causal halo.
    x_long = jax.random.normal(kx2, (2, 128, C_in), jnp.float32)
    _check(x_long, torch_params, kernel_params, l_tile=32)

    print("KERNEL_OK")
</pallas_src>

<mosaic_0001>
module attributes {stable_mosaic.version = 11 : i64} {
  func.func @dilated_block_kernel(%arg0: i32, %arg1: i32, %arg2: memref<1x16x4xf32, #tpu.memory_space<vmem>>, %arg3: memref<4x20x2xf32, #tpu.memory_space<vmem>>, %arg4: memref<4x1x2xf32, #tpu.memory_space<vmem>>, %arg5: memref<8x8xf32, #tpu.memory_space<vmem>>, %arg6: memref<1x8xf32, #tpu.memory_space<vmem>>, %arg7: memref<1x16x8xf32, #tpu.memory_space<vmem>>, %arg8: memref<48x4xf32, #tpu.memory_space<vmem>>, %arg9: memref<32x4xf32, #tpu.memory_space<vmem>>) attributes {dimension_semantics = [#tpu.dimension_semantics<parallel>, #tpu.dimension_semantics<arbitrary>], iteration_bounds = array<i64: 2, 1>, scalar_prefetch = 0 : i64, scratch_operands = 2 : i64, tpu.core_type = #tpu.core_type<tc>, window_params = [{transform_indices = @transform_0, window_bounds = array<i64: 1, 16, 4>}, {pipeline_mode = #tpu.pipeline_mode<synchronous>, transform_indices = @transform_1, window_bounds = array<i64: 4, 20, 2>}, {pipeline_mode = #tpu.pipeline_mode<synchronous>, transform_indices = @transform_2, window_bounds = array<i64: 4, 1, 2>}, {pipeline_mode = #tpu.pipeline_mode<synchronous>, transform_indices = @transform_3, window_bounds = array<i64: 8, 8>}, {pipeline_mode = #tpu.pipeline_mode<synchronous>, transform_indices = @transform_4, window_bounds = array<i64: 1, 8>}, {transform_indices = @transform_5, window_bounds = array<i64: 1, 16, 8>}]} {
    %cst = arith.constant 0.000000e+00 : f32
    %0 = vector.broadcast %cst : f32 to vector<32x4xf32>
    %c0 = arith.constant 0 : index
    %c0_0 = arith.constant 0 : index
    %1 = vector.load %arg8[%c0, %c0_0] : memref<48x4xf32, #tpu.memory_space<vmem>>, vector<32x4xf32>
    tpu.vector_store %arg8[%c0, %c0_0], %0 {strides = array<i32>} : memref<48x4xf32, #tpu.memory_space<vmem>>, vector<32x4xf32>,
    %c0_1 = arith.constant 0 : index
    %c0_2 = arith.constant 0 : index
    %c0_3 = arith.constant 0 : index
    %2 = vector.load %arg2[%c0_1, %c0_2, %c0_3] : memref<1x16x4xf32, #tpu.memory_space<vmem>>, vector<1x16x4xf32>
    %3 = vector.shape_cast %2 : vector<1x16x4xf32> to vector<16x4xf32>
    %c32 = arith.constant 32 : index
    %c0_4 = arith.constant 0 : index
    %4 = vector.load %arg8[%c32, %c0_4] : memref<48x4xf32, #tpu.memory_space<vmem>>, vector<16x4xf32>
    tpu.vector_store %arg8[%c32, %c0_4], %3 {strides = array<i32>} : memref<48x4xf32, #tpu.memory_space<vmem>>, vector<16x4xf32>,
    %cst_5 = arith.constant 0.000000e+00 : f32
    %5 = vector.broadcast %cst_5 : f32 to vector<16x8xf32>
    %c28 = arith.constant 28 : index
    %c0_6 = arith.constant 0 : index
    %6 = vector.load %arg8[%c28, %c0_6] : memref<48x4xf32, #tpu.memory_space<vmem>>, vector<16x4xf32>
    %c29 = arith.constant 29 : index
    %c0_7 = arith.constant 0 : index
    %7 = vector.load %arg8[%c29, %c0_7] : memref<48x4xf32, #tpu.memory_space<vmem>>, vector<16x4xf32>
    %c30 = arith.constant 30 : index
    %c0_8 = arith.constant 0 : index
    %8 = vector.load %arg8[%c30, %c0_8] : memref<48x4xf32, #tpu.memory_space<vmem>>, vector<16x4xf32>
    %c31 = arith.constant 31 : index
    %c0_9 = arith.constant 0 : index
    %9 = vector.load %arg8[%c31, %c0_9] : memref<48x4xf32, #tpu.memory_space<vmem>>, vector<16x4xf32>
    %c32_10 = arith.constant 32 : index
    %c0_11 = arith.constant 0 : index
    %10 = vector.load %arg8[%c32_10, %c0_11] : memref<48x4xf32, #tpu.memory_space<vmem>>, vector<16x4xf32>
    %11 = tpu.concatenate %6, %7, %8, %9, %10 in 1 : vector<16x4xf32>, vector<16x4xf32>, vector<16x4xf32>, vector<16x4xf32>, vector<16x4xf32> -> vector<16x20xf32>
    %c0_12 = arith.constant 0 : index
    %c0_13 = arith.constant 0 : index
    %c0_14 = arith.constant 0 : index
    %12 = vector.load %arg3[%c0_12, %c0_13, %c0_14] : memref<4x20x2xf32, #tpu.memory_space<vmem>>, vector<1x20x2xf32>
    %13 = vector.shape_cast %12 : vector<1x20x2xf32> to vector<20x2xf32>
    %cst_15 = arith.constant dense<0.000000e+00> : vector<16x2xf32>
    %14 = tpu.matmul %11, %13, %cst_15 {dimension_numbers = #tpu.dot_dimension_numbers<[1], [0], [0], [1], [0, 0, 1, 1], [], []>} : vector<16x20xf32>, vector<20x2xf32>, vector<16x2xf32> -> vector<16x2xf32>
    %c0_16 = arith.constant 0 : index
    %c0_17 = arith.constant 0 : index
    %c0_18 = arith.constant 0 : index
    %15 = vector.load %arg4[%c0_16, %c0_17, %c0_18] : memref<4x1x2xf32, #tpu.memory_space<vmem>>, vector<1x1x2xf32>
    %16 = vector.shape_cast %15 : vector<1x1x2xf32> to vector<1x2xf32>
    %17 = vector.broadcast %16 : vector<1x2xf32> to vector<16x2xf32>
    %18 = arith.addf %14, %17 : vector<16x2xf32>
    %cst_19 = arith.constant 5.000000e-01 : f32
    %19 = vector.broadcast %cst_19 : f32 to vector<16x2xf32>
    %20 = arith.mulf %19, %18 : vector<16x2xf32>
    %cst_20 = arith.constant 0.707106769 : f32
    %21 = vector.broadcast %cst_20 : f32 to vector<16x2xf32>
    %22 = arith.mulf %18, %21 : vector<16x2xf32>
    %cst_21 = arith.constant 0.000000e+00 : f32
    %23 = vector.broadcast %cst_21 : f32 to vector<16x2xf32>
    %24 = arith.cmpf oge, %22, %23 : vector<16x2xf32>
    %cst_22 = arith.constant 1.000000e+00 : f32
    %cst_23 = arith.constant -1.000000e+00 : f32
    %25 = vector.broadcast %cst_22 : f32 to vector<16x2xf32>
    %26 = vector.broadcast %cst_23 : f32 to vector<16x2xf32>
    %27 = arith.select %24, %25, %26 : vector<16x2xi1>, vector<16x2xf32>
    %28 = math.absf %22 : vector<16x2xf32>
    %cst_24 = arith.constant 0.327591091 : f32
    %29 = vector.broadcast %cst_24 : f32 to vector<16x2xf32>
    %30 = arith.mulf %29, %28 : vector<16x2xf32>
    %cst_25 = arith.constant 1.000000e+00 : f32
    %31 = vector.broadcast %cst_25 : f32 to vector<16x2xf32>
    %32 = arith.addf %31, %30 : vector<16x2xf32>
    %cst_26 = arith.constant 1.000000e+00 : f32
    %33 = vector.broadcast %cst_26 : f32 to vector<16x2xf32>
    %34 = arith.divf %33, %32 : vector<16x2xf32>
    %cst_27 = arith.constant 1.06140542 : f32
    %35 = vector.broadcast %cst_27 : f32 to vector<16x2xf32>
    %36 = arith.mulf %35, %34 : vector<16x2xf32>
    %cst_28 = arith.constant -1.45315206 : f32
    %37 = vector.broadcast %cst_28 : f32 to vector<16x2xf32>
    %38 = arith.addf %36, %37 : vector<16x2xf32>
    %39 = arith.mulf %38, %34 : vector<16x2xf32>
    %cst_29 = arith.constant 1.42141378 : f32
    %40 = vector.broadcast %cst_29 : f32 to vector<16x2xf32>
    %41 = arith.addf %39, %40 : vector<16x2xf32>
    %42 = arith.mulf %41, %34 : vector<16x2xf32>
    %cst_30 = arith.constant -0.284496725 : f32
    %43 = vector.broadcast %cst_30 : f32 to vector<16x2xf32>
    %44 = arith.addf %42, %43 : vector<16x2xf32>
    %45 = arith.mulf %44, %34 : vector<16x2xf32>
    %cst_31 = arith.constant 0.254829586 : f32
    %46 = vector.broadcast %cst_31 : f32 to vector<16x2xf32>
    %47 = arith.addf %45, %46 : vector<16x2xf32>
    %48 = arith.mulf %47, %34 : vector<16x2xf32>
    %cst_32 = arith.constant 0.000000e+00 : f32
    %49 = vector.broadcast %cst_32 : f32 to vector<16x2xf32>
    %50 = arith.subf %49, %28 : vector<16x2xf32>
    %51 = arith.mulf %50, %28 : vector<16x2xf32>
    %52 = math.exp %51 : vector<16x2xf32>
    %53 = arith.mulf %48, %52 : vector<16x2xf32>
    %cst_33 = arith.constant 1.000000e+00 : f32
    %54 = vector.broadcast %cst_33 : f32 to vector<16x2xf32>
    %55 = arith.subf %54, %53 : vector<16x2xf32>
    %56 = arith.mulf %27, %55 : vector<16x2xf32>
    %cst_34 = arith.constant 1.000000e+00 : f32
    %57 = vector.broadcast %cst_34 : f32 to vector<16x2xf32>
    %58 = arith.addf %57, %56 : vector<16x2xf32>
    %59 = arith.mulf %20, %58 : vector<16x2xf32>
    %c0_35 = arith.constant 0 : index
    %c0_36 = arith.constant 0 : index
    %60 = vector.load %arg5[%c0_35, %c0_36] : memref<8x8xf32, #tpu.memory_space<vmem>>, vector<2x8xf32>
    %cst_37 = arith.constant dense<0.000000e+00> : vector<16x8xf32>
    %61 = tpu.matmul %59, %60, %cst_37 {dimension_numbers = #tpu.dot_dimension_numbers<[1], [0], [0], [1], [0, 0, 1, 1], [], []>} : vector<16x2xf32>, vector<2x8xf32>, vector<16x8xf32> -> vector<16x8xf32>
    %62 = arith.addf %5, %61 : vector<16x8xf32>
    %c24 = arith.constant 24 : index
    %c0_38 = arith.constant 0 : index
    %63 = vector.load %arg8[%c24, %c0_38] : memref<48x4xf32, #tpu.memory_space<vmem>>, vector<16x4xf32>
    %c26 = arith.constant 26 : index
    %c0_39 = arith.constant 0 : index
    %64 = vector.load %arg8[%c26, %c0_39] : memref<48x4xf32, #tpu.memory_space<vmem>>, vector<16x4xf32>
    %c28_40 = arith.constant 28 : index
    %c0_41 = arith.constant 0 : index
    %65 = vector.load %arg8[%c28_40, %c0_41] : memref<48x4xf32, #tpu.memory_space<vmem>>, vector<16x4xf32>
    %c30_42 = arith.constant 30 : index
    %c0_43 = arith.constant 0 : index
    %66 = vector.load %arg8[%c30_42, %c0_43] : memref<48x4xf32, #tpu.memory_space<vmem>>, vector<16x4xf32>
    %c32_44 = arith.constant 32 : index
    %c0_45 = arith.constant 0 : index
    %67 = vector.load %arg8[%c32_44, %c0_45] : memref<48x4xf32, #tpu.memory_space<vmem>>, vector<16x4xf32>
    %68 = tpu.concatenate %63, %64, %65, %66, %67 in 1 : vector<16x4xf32>, vector<16x4xf32>, vector<16x4xf32>, vector<16x4xf32>, vector<16x4xf32> -> vector<16x20xf32>
    %c1 = arith.constant 1 : index
    %c0_46 = arith.constant 0 : index
    %c0_47 = arith.constant 0 : index
    %69 = vector.load %arg3[%c1, %c0_46, %c0_47] : memref<4x20x2xf32, #tpu.memory_space<vmem>>, vector<1x20x2xf32>
    %70 = vector.shape_cast %69 : vector<1x20x2xf32> to vector<20x2xf32>
    %cst_48 = arith.constant dense<0.000000e+00> : vector<16x2xf32>
    %71 = tpu.matmul %68, %70, %cst_48 {dimension_numbers = #tpu.dot_dimension_numbers<[1], [0], [0], [1], [0, 0, 1, 1], [], []>} : vector<16x20xf32>, vector<20x2xf32>, vector<16x2xf32> -> vector<16x2xf32>
    %c1_49 = arith.constant 1 : index
    %c0_50 = arith.constant 0 : index
    %c0_51 = arith.constant 0 : index
    %72 = vector.load %arg4[%c1_49, %c0_50, %c0_51] : memref<4x1x2xf32, #tpu.memory_space<vmem>>, vector<1x1x2xf32>
    %73 = vector.shape_cast %72 : vector<1x1x2xf32> to vector<1x2xf32>
    %74 = vector.broadcast %73 : vector<1x2xf32> to vector<16x2xf32>
    %75 = arith.addf %71, %74 : vector<16x2xf32>
    %cst_52 = arith.constant 5.000000e-01 : f32
    %76 = vector.broadcast %cst_52 : f32 to vector<16x2xf32>
    %77 = arith.mulf %76, %75 : vector<16x2xf32>
    %cst_53 = arith.constant 0.707106769 : f32
    %78 = vector.broadcast %cst_53 : f32 to vector<16x2xf32>
    %79 = arith.mulf %75, %78 : vector<16x2xf32>
    %cst_54 = arith.constant 0.000000e+00 : f32
    %80 = vector.broadcast %cst_54 : f32 to vector<16x2xf32>
    %81 = arith.cmpf oge, %79, %80 : vector<16x2xf32>
    %cst_55 = arith.constant 1.000000e+00 : f32
    %cst_56 = arith.constant -1.000000e+00 : f32
    %82 = vector.broadcast %cst_55 : f32 to vector<16x2xf32>
    %83 = vector.broadcast %cst_56 : f32 to vector<16x2xf32>
    %84 = arith.select %81, %82, %83 : vector<16x2xi1>, vector<16x2xf32>
    %85 = math.absf %79 : vector<16x2xf32>
    %cst_57 = arith.constant 0.327591091 : f32
    %86 = vector.broadcast %cst_57 : f32 to vector<16x2xf32>
    %87 = arith.mulf %86, %85 : vector<16x2xf32>
    %cst_58 = arith.constant 1.000000e+00 : f32
    %88 = vector.broadcast %cst_58 : f32 to vector<16x2xf32>
    %89 = arith.addf %88, %87 : vector<16x2xf32>
    %cst_59 = arith.constant 1.000000e+00 : f32
    %90 = vector.broadcast %cst_59 : f32 to vector<16x2xf32>
    %91 = arith.divf %90, %89 : vector<16x2xf32>
    %cst_60 = arith.constant 1.06140542 : f32
    %92 = vector.broadcast %cst_60 : f32 to vector<16x2xf32>
    %93 = arith.mulf %92, %91 : vector<16x2xf32>
    %cst_61 = arith.constant -1.45315206 : f32
    %94 = vector.broadcast %cst_61 : f32 to vector<16x2xf32>
    %95 = arith.addf %93, %94 : vector<16x2xf32>
    %96 = arith.mulf %95, %91 : vector<16x2xf32>
    %cst_62 = arith.constant 1.42141378 : f32
    %97 = vector.broadcast %cst_62 : f32 to vector<16x2xf32>
    %98 = arith.addf %96, %97 : vector<16x2xf32>
    %99 = arith.mulf %98, %91 : vector<16x2xf32>
    %cst_63 = arith.constant -0.284496725 : f32
    %100 = vector.broadcast %cst_63 : f32 to vector<16x2xf32>
    %101 = arith.addf %99, %100 : vector<16x2xf32>
    %102 = arith.mulf %101, %91 : vector<16x2xf32>
    %cst_64 = arith.constant 0.254829586 : f32
    %103 = vector.broadcast %cst_64 : f32 to vector<16x2xf32>
    %104 = arith.addf %102, %103 : vector<16x2xf32>
    %105 = arith.mulf %104, %91 : vector<16x2xf32>
    %cst_65 = arith.constant 0.000000e+00 : f32
    %106 = vector.broadcast %cst_65 : f32 to vector<16x2xf32>
    %107 = arith.subf %106, %85 : vector<16x2xf32>
    %108 = arith.mulf %107, %85 : vector<16x2xf32>
    %109 = math.exp %108 : vector<16x2xf32>
    %110 = arith.mulf %105, %109 : vector<16x2xf32>
    %cst_66 = arith.constant 1.000000e+00 : f32
    %111 = vector.broadcast %cst_66 : f32 to vector<16x2xf32>
    %112 = arith.subf %111, %110 : vector<16x2xf32>
    %113 = arith.mulf %84, %112 : vector<16x2xf32>
    %cst_67 = arith.constant 1.000000e+00 : f32
    %114 = vector.broadcast %cst_67 : f32 to vector<16x2xf32>
    %115 = arith.addf %114, %113 : vector<16x2xf32>
    %116 = arith.mulf %77, %115 : vector<16x2xf32>
    %c2 = arith.constant 2 : index
    %c0_68 = arith.constant 0 : index
    %117 = vector.load %arg5[%c2, %c0_68] : memref<8x8xf32, #tpu.memory_space<vmem>>, vector<2x8xf32>
    %cst_69 = arith.constant dense<0.000000e+00> : vector<16x8xf32>
    %118 = tpu.matmul %116, %117, %cst_69 {dimension_numbers = #tpu.dot_dimension_numbers<[1], [0], [0], [1], [0, 0, 1, 1], [], []>} : vector<16x2xf32>, vector<2x8xf32>, vector<16x8xf32> -> vector<16x8xf32>
    %119 = arith.addf %62, %118 : vector<16x8xf32>
    %c16 = arith.constant 16 : index
    %c0_70 = arith.constant 0 : index
    %120 = vector.load %arg8[%c16, %c0_70] : memref<48x4xf32, #tpu.memory_space<vmem>>, vector<16x4xf32>
    %c20 = arith.constant 20 : index
    %c0_71 = arith.constant 0 : index
    %121 = vector.load %arg8[%c20, %c0_71] : memref<48x4xf32, #tpu.memory_space<vmem>>, vector<16x4xf32>
    %c24_72 = arith.constant 24 : index
    %c0_73 = arith.constant 0 : index
    %122 = vector.load %arg8[%c24_72, %c0_73] : memref<48x4xf32, #tpu.memory_space<vmem>>, vector<16x4xf32>
    %c28_74 = arith.constant 28 : index
    %c0_75 = arith.constant 0 : index
    %123 = vector.load %arg8[%c28_74, %c0_75] : memref<48x4xf32, #tpu.memory_space<vmem>>, vector<16x4xf32>
    %c32_76 = arith.constant 32 : index
    %c0_77 = arith.constant 0 : index
    %124 = vector.load %arg8[%c32_76, %c0_77] : memref<48x4xf32, #tpu.memory_space<vmem>>, vector<16x4xf32>
    %125 = tpu.concatenate %120, %121, %122, %123, %124 in 1 : vector<16x4xf32>, vector<16x4xf32>, vector<16x4xf32>, vector<16x4xf32>, vector<16x4xf32> -> vector<16x20xf32>
    %c2_78 = arith.constant 2 : index
    %c0_79 = arith.constant 0 : index
    %c0_80 = arith.constant 0 : index
    %126 = vector.load %arg3[%c2_78, %c0_79, %c0_80] : memref<4x20x2xf32, #tpu.memory_space<vmem>>, vector<1x20x2xf32>
    %127 = vector.shape_cast %126 : vector<1x20x2xf32> to vector<20x2xf32>
    %cst_81 = arith.constant dense<0.000000e+00> : vector<16x2xf32>
    %128 = tpu.matmul %125, %127, %cst_81 {dimension_numbers = #tpu.dot_dimension_numbers<[1], [0], [0], [1], [0, 0, 1, 1], [], []>} : vector<16x20xf32>, vector<20x2xf32>, vector<16x2xf32> -> vector<16x2xf32>
    %c2_82 = arith.constant 2 : index
    %c0_83 = arith.constant 0 : index
    %c0_84 = arith.constant 0 : index
    %129 = vector.load %arg4[%c2_82, %c0_83, %c0_84] : memref<4x1x2xf32, #tpu.memory_space<vmem>>, vector<1x1x2xf32>
    %130 = vector.shape_cast %129 : vector<1x1x2xf32> to vector<1x2xf32>
    %131 = vector.broadcast %130 : vector<1x2xf32> to vector<16x2xf32>
    %132 = arith.addf %128, %131 : vector<16x2xf32>
    %cst_85 = arith.constant 5.000000e-01 : f32
    %133 = vector.broadcast %cst_85 : f32 to vector<16x2xf32>
    %134 = arith.mulf %133, %132 : vector<16x2xf32>
    %cst_86 = arith.constant 0.707106769 : f32
    %135 = vector.broadcast %cst_86 : f32 to vector<16x2xf32>
    %136 = arith.mulf %132, %135 : vector<16x2xf32>
    %cst_87 = arith.constant 0.000000e+00 : f32
    %137 = vector.broadcast %cst_87 : f32 to vector<16x2xf32>
    %138 = arith.cmpf oge, %136, %137 : vector<16x2xf32>
    %cst_88 = arith.constant 1.000000e+00 : f32
    %cst_89 = arith.constant -1.000000e+00 : f32
    %139 = vector.broadcast %cst_88 : f32 to vector<16x2xf32>
    %140 = vector.broadcast %cst_89 : f32 to vector<16x2xf32>
    %141 = arith.select %138, %139, %140 : vector<16x2xi1>, vector<16x2xf32>
    %142 = math.absf %136 : vector<16x2xf32>
    %cst_90 = arith.constant 0.327591091 : f32
    %143 = vector.broadcast %cst_90 : f32 to vector<16x2xf32>
    %144 = arith.mulf %143, %142 : vector<16x2xf32>
    %cst_91 = arith.constant 1.000000e+00 : f32
    %145 = vector.broadcast %cst_91 : f32 to vector<16x2xf32>
    %146 = arith.addf %145, %144 : vector<16x2xf32>
    %cst_92 = arith.constant 1.000000e+00 : f32
    %147 = vector.broadcast %cst_92 : f32 to vector<16x2xf32>
    %148 = arith.divf %147, %146 : vector<16x2xf32>
    %cst_93 = arith.constant 1.06140542 : f32
    %149 = vector.broadcast %cst_93 : f32 to vector<16x2xf32>
    %150 = arith.mulf %149, %148 : vector<16x2xf32>
    %cst_94 = arith.constant -1.45315206 : f32
    %151 = vector.broadcast %cst_94 : f32 to vector<16x2xf32>
    %152 = arith.addf %150, %151 : vector<16x2xf32>
    %153 = arith.mulf %152, %148 : vector<16x2xf32>
    %cst_95 = arith.constant 1.42141378 : f32
    %154 = vector.broadcast %cst_95 : f32 to vector<16x2xf32>
    %155 = arith.addf %153, %154 : vector<16x2xf32>
    %156 = arith.mulf %155, %148 : vector<16x2xf32>
    %cst_96 = arith.constant -0.284496725 : f32
    %157 = vector.broadcast %cst_96 : f32 to vector<16x2xf32>
    %158 = arith.addf %156, %157 : vector<16x2xf32>
    %159 = arith.mulf %158, %148 : vector<16x2xf32>
    %cst_97 = arith.constant 0.254829586 : f32
    %160 = vector.broadcast %cst_97 : f32 to vector<16x2xf32>
    %161 = arith.addf %159, %160 : vector<16x2xf32>
    %162 = arith.mulf %161, %148 : vector<16x2xf32>
    %cst_98 = arith.constant 0.000000e+00 : f32
    %163 = vector.broadcast %cst_98 : f32 to vector<16x2xf32>
    %164 = arith.subf %163, %142 : vector<16x2xf32>
    %165 = arith.mulf %164, %142 : vector<16x2xf32>
    %166 = math.exp %165 : vector<16x2xf32>
    %167 = arith.mulf %162, %166 : vector<16x2xf32>
    %cst_99 = arith.constant 1.000000e+00 : f32
    %168 = vector.broadcast %cst_99 : f32 to vector<16x2xf32>
    %169 = arith.subf %168, %167 : vector<16x2xf32>
    %170 = arith.mulf %141, %169 : vector<16x2xf32>
    %cst_100 = arith.constant 1.000000e+00 : f32
    %171 = vector.broadcast %cst_100 : f32 to vector<16x2xf32>
    %172 = arith.addf %171, %170 : vector<16x2xf32>
    %173 = arith.mulf %134, %172 : vector<16x2xf32>
    %c4 = arith.constant 4 : index
    %c0_101 = arith.constant 0 : index
    %174 = vector.load %arg5[%c4, %c0_101] : memref<8x8xf32, #tpu.memory_space<vmem>>, vector<2x8xf32>
    %cst_102 = arith.constant dense<0.000000e+00> : vector<16x8xf32>
    %175 = tpu.matmul %173, %174, %cst_102 {dimension_numbers = #tpu.dot_dimension_numbers<[1], [0], [0], [1], [0, 0, 1, 1], [], []>} : vector<16x2xf32>, vector<2x8xf32>, vector<16x8xf32> -> vector<16x8xf32>
    %176 = arith.addf %119, %175 : vector<16x8xf32>
    %c0_103 = arith.constant 0 : index
    %c0_104 = arith.constant 0 : index
    %177 = vector.load %arg8[%c0_103, %c0_104] : memref<48x4xf32, #tpu.memory_space<vmem>>, vector<16x4xf32>
    %c8 = arith.constant 8 : index
    %c0_105 = arith.constant 0 : index
    %178 = vector.load %arg8[%c8, %c0_105] : memref<48x4xf32, #tpu.memory_space<vmem>>, vector<16x4xf32>
    %c16_106 = arith.constant 16 : index
    %c0_107 = arith.constant 0 : index
    %179 = vector.load %arg8[%c16_106, %c0_107] : memref<48x4xf32, #tpu.memory_space<vmem>>, vector<16x4xf32>
    %c24_108 = arith.constant 24 : index
    %c0_109 = arith.constant 0 : index
    %180 = vector.load %arg8[%c24_108, %c0_109] : memref<48x4xf32, #tpu.memory_space<vmem>>, vector<16x4xf32>
    %c32_110 = arith.constant 32 : index
    %c0_111 = arith.constant 0 : index
    %181 = vector.load %arg8[%c32_110, %c0_111] : memref<48x4xf32, #tpu.memory_space<vmem>>, vector<16x4xf32>
    %182 = tpu.concatenate %177, %178, %179, %180, %181 in 1 : vector<16x4xf32>, vector<16x4xf32>, vector<16x4xf32>, vector<16x4xf32>, vector<16x4xf32> -> vector<16x20xf32>
    %c3 = arith.constant 3 : index
    %c0_112 = arith.constant 0 : index
    %c0_113 = arith.constant 0 : index
    %183 = vector.load %arg3[%c3, %c0_112, %c0_113] : memref<4x20x2xf32, #tpu.memory_space<vmem>>, vector<1x20x2xf32>
    %184 = vector.shape_cast %183 : vector<1x20x2xf32> to vector<20x2xf32>
    %cst_114 = arith.constant dense<0.000000e+00> : vector<16x2xf32>
    %185 = tpu.matmul %182, %184, %cst_114 {dimension_numbers = #tpu.dot_dimension_numbers<[1], [0], [0], [1], [0, 0, 1, 1], [], []>} : vector<16x20xf32>, vector<20x2xf32>, vector<16x2xf32> -> vector<16x2xf32>
    %c3_115 = arith.constant 3 : index
    %c0_116 = arith.constant 0 : index
    %c0_117 = arith.constant 0 : index
    %186 = vector.load %arg4[%c3_115, %c0_116, %c0_117] : memref<4x1x2xf32, #tpu.memory_space<vmem>>, vector<1x1x2xf32>
    %187 = vector.shape_cast %186 : vector<1x1x2xf32> to vector<1x2xf32>
    %188 = vector.broadcast %187 : vector<1x2xf32> to vector<16x2xf32>
    %189 = arith.addf %185, %188 : vector<16x2xf32>
    %cst_118 = arith.constant 5.000000e-01 : f32
    %190 = vector.broadcast %cst_118 : f32 to vector<16x2xf32>
    %191 = arith.mulf %190, %189 : vector<16x2xf32>
    %cst_119 = arith.constant 0.707106769 : f32
    %192 = vector.broadcast %cst_119 : f32 to vector<16x2xf32>
    %193 = arith.mulf %189, %192 : vector<16x2xf32>
    %cst_120 = arith.constant 0.000000e+00 : f32
    %194 = vector.broadcast %cst_120 : f32 to vector<16x2xf32>
    %195 = arith.cmpf oge, %193, %194 : vector<16x2xf32>
    %cst_121 = arith.constant 1.000000e+00 : f32
    %cst_122 = arith.constant -1.000000e+00 : f32
    %196 = vector.broadcast %cst_121 : f32 to vector<16x2xf32>
    %197 = vector.broadcast %cst_122 : f32 to vector<16x2xf32>
    %198 = arith.select %195, %196, %197 : vector<16x2xi1>, vector<16x2xf32>
    %199 = math.absf %193 : vector<16x2xf32>
    %cst_123 = arith.constant 0.327591091 : f32
    %200 = vector.broadcast %cst_123 : f32 to vector<16x2xf32>
    %201 = arith.mulf %200, %199 : vector<16x2xf32>
    %cst_124 = arith.constant 1.000000e+00 : f32
    %202 = vector.broadcast %cst_124 : f32 to vector<16x2xf32>
    %203 = arith.addf %202, %201 : vector<16x2xf32>
    %cst_125 = arith.constant 1.000000e+00 : f32
    %204 = vector.broadcast %cst_125 : f32 to vector<16x2xf32>
    %205 = arith.divf %204, %203 : vector<16x2xf32>
    %cst_126 = arith.constant 1.06140542 : f32
    %206 = vector.broadcast %cst_126 : f32 to vector<16x2xf32>
    %207 = arith.mulf %206, %205 : vector<16x2xf32>
    %cst_127 = arith.constant -1.45315206 : f32
    %208 = vector.broadcast %cst_127 : f32 to vector<16x2xf32>
    %209 = arith.addf %207, %208 : vector<16x2xf32>
    %210 = arith.mulf %209, %205 : vector<16x2xf32>
    %cst_128 = arith.constant 1.42141378 : f32
    %211 = vector.broadcast %cst_128 : f32 to vector<16x2xf32>
    %212 = arith.addf %210, %211 : vector<16x2xf32>
    %213 = arith.mulf %212, %205 : vector<16x2xf32>
    %cst_129 = arith.constant -0.284496725 : f32
    %214 = vector.broadcast %cst_129 : f32 to vector<16x2xf32>
    %215 = arith.addf %213, %214 : vector<16x2xf32>
    %216 = arith.mulf %215, %205 : vector<16x2xf32>
    %cst_130 = arith.constant 0.254829586 : f32
    %217 = vector.broadcast %cst_130 : f32 to vector<16x2xf32>
    %218 = arith.addf %216, %217 : vector<16x2xf32>
    %219 = arith.mulf %218, %205 : vector<16x2xf32>
    %cst_131 = arith.constant 0.000000e+00 : f32
    %220 = vector.broadcast %cst_131 : f32 to vector<16x2xf32>
    %221 = arith.subf %220, %199 : vector<16x2xf32>
    %222 = arith.mulf %221, %199 : vector<16x2xf32>
    %223 = math.exp %222 : vector<16x2xf32>
    %224 = arith.mulf %219, %223 : vector<16x2xf32>
    %cst_132 = arith.constant 1.000000e+00 : f32
    %225 = vector.broadcast %cst_132 : f32 to vector<16x2xf32>
    %226 = arith.subf %225, %224 : vector<16x2xf32>
    %227 = arith.mulf %198, %226 : vector<16x2xf32>
    %cst_133 = arith.constant 1.000000e+00 : f32
    %228 = vector.broadcast %cst_133 : f32 to vector<16x2xf32>
    %229 = arith.addf %228, %227 : vector<16x2xf32>
    %230 = arith.mulf %191, %229 : vector<16x2xf32>
    %c6 = arith.constant 6 : index
    %c0_134 = arith.constant 0 : index
    %231 = vector.load %arg5[%c6, %c0_134] : memref<8x8xf32, #tpu.memory_space<vmem>>, vector<2x8xf32>
    %cst_135 = arith.constant dense<0.000000e+00> : vector<16x8xf32>
    %232 = tpu.matmul %230, %231, %cst_135 {dimension_numbers = #tpu.dot_dimension_numbers<[1], [0], [0], [1], [0, 0, 1, 1], [], []>} : vector<16x2xf32>, vector<2x8xf32>, vector<16x8xf32> -> vector<16x8xf32>
    %233 = arith.addf %176, %232 : vector<16x8xf32>
    %c0_136 = arith.constant 0 : index
    %c0_137 = arith.constant 0 : index
    %234 = vector.load %arg6[%c0_136, %c0_137] : memref<1x8xf32, #tpu.memory_space<vmem>>, vector<1x8xf32>
    %235 = vector.broadcast %234 : vector<1x8xf32> to vector<16x8xf32>
    %236 = arith.addf %233, %235 : vector<16x8xf32>
    %c0_138 = arith.constant 0 : index
    %c0_139 = arith.constant 0 : index
    %c0_140 = arith.constant 0 : index
    %237 = vector.load %arg7[%c0_138, %c0_139, %c0_140] : memref<1x16x8xf32, #tpu.memory_space<vmem>>, vector<1x16x8xf32>
    %238 = vector.shape_cast %237 : vector<1x16x8xf32> to vector<16x8xf32>
    %239 = vector.shape_cast %236 : vector<16x8xf32> to vector<1x16x8xf32>
    tpu.vector_store %arg7[%c0_138, %c0_139, %c0_140], %239 {strides = array<i32>} : memref<1x16x8xf32, #tpu.memory_space<vmem>>, vector<1x16x8xf32>,
    return
  }
  func.func @transform_0(%arg0: i32, %arg1: i32) -> (i32, i32, i32) {
    %c0_i32 = arith.constant 0 : i32
    %c0_i32_0 = arith.constant 0 : i32
    return %arg0, %arg1, %c0_i32 : i32, i32, i32
  }
  func.func @transform_1(%arg0: i32, %arg1: i32) -> (i32, i32, i32) {
    %c0_i32 = arith.constant 0 : i32
    %c0_i32_0 = arith.constant 0 : i32
    %c0_i32_1 = arith.constant 0 : i32
    %c0_i32_2 = arith.constant 0 : i32
    return %c0_i32, %c0_i32_0, %c0_i32_1 : i32, i32, i32
  }
  func.func @transform_2(%arg0: i32, %arg1: i32) -> (i32, i32, i32) {
    %c0_i32 = arith.constant 0 : i32
    %c0_i32_0 = arith.constant 0 : i32
    %c0_i32_1 = arith.constant 0 : i32
    %c0_i32_2 = arith.constant 0 : i32
    return %c0_i32, %c0_i32_0, %c0_i32_1 : i32, i32, i32
  }
  func.func @transform_3(%arg0: i32, %arg1: i32) -> (i32, i32) {
    %c0_i32 = arith.constant 0 : i32
    %c0_i32_0 = arith.constant 0 : i32
    %c0_i32_1 = arith.constant 0 : i32
    return %c0_i32, %c0_i32_0 : i32, i32
  }
  func.func @transform_4(%arg0: i32, %arg1: i32) -> (i32, i32) {
    %c0_i32 = arith.constant 0 : i32
    %c0_i32_0 = arith.constant 0 : i32
    %c0_i32_1 = arith.constant 0 : i32
    return %c0_i32, %c0_i32_0 : i32, i32
  }
  func.func @transform_5(%arg0: i32, %arg1: i32) -> (i32, i32, i32) {
    %c0_i32 = arith.constant 0 : i32
    %c0_i32_0 = arith.constant 0 : i32
    return %arg0, %arg1, %c0_i32 : i32, i32, i32
  }
}

</mosaic_0001>

<bundles_post_ra>
// kernel: tpu_custom_call.1
= control target key start
LH: loop header
LB: loop body
LE: loop exit
PB: predicated region body
PF: predicated region fallthrough
CT: control target
= control target key end

     0   :  { %s1735_s18 = smov 0   ;;  %s1737_s19 = smov 0   ;;  %s2021_s0 = inlined_call_operand.vmem [shape: f32[2,16,4], index: 0, kind: input, shape index: {}]   ;;  %s2022_s1 = inlined_call_operand.vmem [shape: f32[4,20,2], index: 1, kind: input, shape index: {}]   ;;  %s2023_s2 = inlined_call_operand.vmem [shape: f32[4,1,2], index: 2, kind: input, shape index: {}]   ;;  %s2024_s3 = inlined_call_operand.vmem [shape: f32[8,8], index: 3, kind: input, shape index: {}]   ;;  %s2025_s4 = inlined_call_operand.vmem [shape: f32[1,8], index: 4, kind: input, shape index: {}]   ;;  %s2026_s5 = inlined_call_operand.vmem [shape: f32[2,16,8], index: 5, kind: output, shape index: {}]  }
   0x1   :  { %s1739_s20 = smov 0  }
   0x2 LB: > { %s27_s21 = sadd.s32 1, %s1693_s19  ;;  %p1475_p0 = scmp.ge.s32.totalorder %s1697_s20, 1  ;;  %s1697_s20 = sphi %s1739_s20, %s15_s20   ;;  %s1693_s19 = sphi %s1737_s19, %s2028_s19   ;;  %s1689_s18 = sphi %s1735_s18, %s2027_s18  }
   0x3   : > { %p29_p1 = scmp.ge.s32.totalorder %s27_s21, 2  ;;  %p208_p2 = scmp.lt.s32.totalorder %s1697_s20, 3 }
   0x5   : > { %s2030_s21 = smov (%p29_p1, %s27_s21), 0  ;;  %p209_p3 = pnand %p1475_p0, %p208_p2 }
   0x6   : > { %p245_p4 = scmp.lt.s32.totalorder (!%p209_p3), %s1689_s18, 1  ;;  %s1700_s7 = smov (!%p209_p3), 4  }
   0x7   : > { %212 = sbr.rel (%p209_p3) target bundleno = 1109 (0x455), region = 40  ;;  %s1701_s8 = smov (!%p209_p3), 8  }
   0x8   : > { %s1702_s11 = smov (!%p209_p3), 12   ;;  %s1703_s12 = smov (!%p209_p3), 16  }
   0xc   : > { %vm264_vm0 = vcmask 31744   ;;  %v1699_v0 = vmov 0.0   ;;  %s2032_s18 = smov (!%p245_p4, %s1689_s18), 1  ;;  %vm343_vm1 = vcmask 1043456   ;;  %v1486_v3 = vld [vmem:[%s2022_s1 + $0x28] sm:$0xf] }
   0xd   : > { %268 = vst.msk [vmem:[#allocation2 + $0x18] sm:$0xff] %vm264_vm0, %v1699_v0  ;;  %265 = vst.msk [vmem:[#allocation2] sm:$0xff] %vm264_vm0, %v1699_v0  ;;  %s1523_s22 = sshll.u32 %s2032_s18, 4  ;;  %1566 = vmatprep.subr.msk.mxu1 %vm343_vm1, %v1486_v3  ;;  %v1485_v4 = vld [vmem:[%s2022_s1 + $0x20] sm:$0xff]  ;;  %v1484_v5 = vld [vmem:[%s2022_s1 + $0x18] sm:$0xff]  ;;  %vm317_vm2 = vcmask 64512  }
   0xe   : > { %266 = vst.msk [vmem:[#allocation2 + $0x8] sm:$0xff] %vm264_vm0, %v1699_v0  ;;  %267 = vst.msk [vmem:[#allocation2 + $0x10] sm:$0xff] %vm264_vm0, %v1699_v0  ;;  %s252_s25 = scalar_lea.vmem %s2021_s0, %s1523_s22  ;;  %1567 = vmatpush3.msk.msra.mxu1 %vm343_vm1, %v1486_v3  ;;  %v328_v12 = vld [vmem:[%s2022_s1 + $0x10] sm:$0xf]  ;;  %v327_v13 = vld [vmem:[%s2022_s1 + $0x8] sm:$0xff]  ;;  %vm320_vm3 = vcmask 97280   ;;  %s262_s9 = scalar_lea.vmem %s2026_s5, %s1523_s22 }
   0xf   : > { %v269_v1 = vld [vmem:[%s252_s25] sm:$0xff]  ;;  %v270_v2 = vld [vmem:[%s252_s25 + $0x8] sm:$0xff]  ;;  %1568 = vmatprep.subr.mxu1 %v1485_v4  ;;  %1557 = vmatprep.subr.msk.mxu0 %vm343_vm1, %v328_v12  ;;  %vm323_vm4 = vcmask 130048   ;;  %vm336_vm5 = vcmask 162816   ;;  %vm669_vm6 = vcmask 1041408   ;;  %vm662_vm9 = vcmask 15360  }
  0x10   : > { %271 = vst.msk [vmem:[#allocation2 + $0x20] sm:$0xff] %vm264_vm0, %v269_v1  ;;  %272 = vst.msk [vmem:[#allocation2 + $0x28] sm:$0xff] %vm264_vm0, %v270_v2  ;;  %1569 = vmatpush3.msra.mxu1 %v1485_v4  ;;  %1558 = vmatpush3.msk.msra.mxu0 %vm343_vm1, %v328_v12  ;;  %v326_v16 = vld [vmem:[%s2022_s1] sm:$0xff] }
  0x11   : > { %1570 = vmatprep.subr.mxu1 %v1484_v5  ;;  %1559 = vmatprep.subr.mxu0 %v327_v13 }
  0x12   : > { %1571 = vmatpush3.msra.mxu1 %v1484_v5  ;;  %1560 = vmatpush3.msra.mxu0 %v327_v13 }
  0x13   : > { %1561 = vmatprep.subr.mxu0 %v326_v16 }
  0x14   : > { %1562 = vmatpush3.msra.mxu0 %v326_v16  ;;  %v477_v22 = vld [vmem:[#allocation2 + $0x18] sm:$0xff]  ;;  %v1103_v5 = vld [vmem:[#allocation2] sm:$0xff] }
  0x15   : > { %v834_v21 = vld [vmem:[#allocation2 + $0x14] sm:$0xff]  ;;  %v1816_v23 = vld [vmem:[#allocation2 + $0x8] sm:$0xff] }
  0x16   : > { %v1105_v24 = vld [vmem:[#allocation2 + $0x10] sm:$0xff] }
  0x17   : > { %v479_v6 = vld [vmem:[#allocation2 + $0x1a] sm:$0xff]  ;;  %v480_v8 = vld [vmem:[#allocation2 + $0x22] sm:$0xff] }
  0x18   : > { %v1778_v7 = vld [vmem:[#allocation2 + $0x1c] sm:$0xff]  ;;  %483 = vrot.lane.b32.xlu0 %v479_v6, %s1700_s7  ;;  %v1783_v9 = vld [vmem:[#allocation2 + $0x24] sm:$0xff] }
  0x19   : > { %491 = vrot.lane.b32.xlu1 %v1778_v7, %s1701_s8  ;;  %v277_v10 = vld [vmem:[#allocation2 + $0x1e] sm:$0xff]  ;;  %v278_v14 = vld [vmem:[#allocation2 + $0x26] sm:$0xff] }
  0x1a   : > { %v281_v11 = vld [vmem:[#allocation2 + $0x20] sm:$0xff]  ;;  %v282_v15 = vld [vmem:[#allocation2 + $0x28] sm:$0xff] }
  0x1b   : > { %v275_v17 = vld [vmem:[#allocation2 + $0x1d] sm:$0xff]  ;;  %v276_v18 = vld [vmem:[#allocation2 + $0x25] sm:$0xff] }
  0x1c   : > { %485 = vrot.lane.b32.xlu0 %v480_v8, %s1700_s7  ;;  %v279_v19 = vld [vmem:[#allocation2 + $0x1f] sm:$0xff]  ;;  %v280_v20 = vld [vmem:[#allocation2 + $0x27] sm:$0xff] }
  0x1d   : > { %493 = vrot.lane.b32.xlu1 %v1783_v9, %s1701_s8 }
  0x20   : > { %497 = vrot.lane.b32.xlu0 %v277_v10, %s1702_s11 }
  0x21   : > { %309 = vrot.lane.b32.xlu1 %v281_v11, %s1703_s12 }
  0x24   : > { %499 = vrot.lane.b32.xlu0 %v278_v14, %s1702_s11 }
  0x25   : > { %311 = vrot.lane.b32.xlu1 %v282_v15, %s1703_s12 }
  0x28   : > { %285 = vrot.lane.b32.xlu0 %v275_v17, %s1700_s7 }
  0x29   : > { %287 = vrot.lane.b32.xlu1 %v276_v18, %s1700_s7 }
  0x2c   : > { %293 = vrot.lane.b32.xlu0 %v277_v10, %s1701_s8 }
  0x2d   : > { %295 = vrot.lane.b32.xlu1 %v278_v14, %s1701_s8 }
  0x30   : > { %301 = vrot.lane.b32.xlu0 %v279_v19, %s1702_s11 }
  0x31   : > { %303 = vrot.lane.b32.xlu1 %v280_v20, %s1702_s11  ;;  %v661_v20 = vld [vmem:[%s2024_s3 + $0x2] sm:$0x3] }
  0x32   : > { %1575 = vmatprep.subr.msk.mxu0 %vm669_vm6, %v661_v20 }
  0x34   : > { %838 = vrot.lane.b32.xlu0 %v834_v21, %s1700_s7  ;;  %v1880_v21 = vld [vmem:[%s2022_s1 + $0x40] sm:$0xf] }
  0x35   : > { %840 = vrot.lane.b32.xlu1 %v1778_v7, %s1700_s7 }
  0x38   : > { %846 = vrot.lane.b32.xlu0 %v477_v22, %s1701_s8 }
  0x39   : > { %848 = vrot.lane.b32.xlu1 %v281_v11, %s1701_s8 }
  0x3c   : > { %852 = vrot.lane.b32.xlu0 %v1778_v7, %s1702_s11 }
  0x3d   : > { %854 = vrot.lane.b32.xlu1 %v1783_v9, %s1702_s11 }
  0x40   : > { %1108 = vrot.lane.b32.xlu0 %v1816_v23, %s1700_s7 }
  0x41   : > { %1110 = vrot.lane.b32.xlu1 %v1105_v24, %s1700_s7 }
  0x44   : > { %1116 = vrot.lane.b32.xlu0 %v1105_v24, %s1701_s8 }
  0x45   : > { %1118 = vrot.lane.b32.xlu1 %v477_v22, %s1701_s8 }
  0x48   : > { %1122 = vrot.lane.b32.xlu0 %v477_v22, %s1702_s11 }
  0x49   : > { %1124 = vrot.lane.b32.xlu1 %v281_v11, %s1702_s11 }
  0x8a   : > { %v484_v25 = vpop.permute.xlu0 %483 }
  0x8b   : > { %v492_v26 = vpop.permute.xlu1 %491  ;;  %v503_v29 = vsel %vm264_vm0, %v477_v22, %v484_v25 }
  0x8c   : > { %v505_v30 = vsel %vm317_vm2, %v503_v29, %v492_v26 }
  0x8e   : > { %v486_v27 = vpop.permute.xlu0 %485 }
  0x8f   : > { %v494_v28 = vpop.permute.xlu1 %493  ;;  %v504_v33 = vsel %vm264_vm0, %v281_v11, %v486_v27 }
  0x90   : > { %v506_v36 = vsel %vm317_vm2, %v504_v33, %v494_v28 }
  0x92   : > { %v498_v31 = vpop.permute.xlu0 %497 }
  0x93   : > { %v310_v32 = vpop.permute.xlu1 %309  ;;  %v507_v34 = vsel %vm320_vm3, %v505_v30, %v498_v31 }
  0x94   : > { %v509_v35 = vsel %vm323_vm4, %v507_v34, %v310_v32 }
  0x95   : > { %1572 = vmatprep.mubr.msk.f32.mxu1 %vm336_vm5, %v509_v35 }
  0x96   : > { %v500_v37 = vpop.permute.xlu0 %499 }
  0x97   : > { %v312_v38 = vpop.permute.xlu1 %311  ;;  %v508_v39 = vsel %vm320_vm3, %v506_v36, %v500_v37  ;;  %v1480_v36 = vld [vmem:[%s2023_s2] ss:$0 sm:$0xff] }
  0x98   : > { %v510_v40 = vsel %vm323_vm4, %v508_v39, %v312_v38 }
  0x99   : > { %1573 = vmatmul.mubr.msk.f32.vlgmr.msra.gmra.mxu1 %vm336_vm5, %v510_v40 }
  0x9a   : > { %v286_v41 = vpop.permute.xlu0 %285 }
  0x9b   : > { %v288_v42 = vpop.permute.xlu1 %287  ;;  %v315_v43 = vsel %vm264_vm0, %v1778_v7, %v286_v41 }
  0x9c   : > { %v316_v44 = vsel %vm264_vm0, %v1783_v9, %v288_v42 }
  0x9e   : > { %v294_v45 = vpop.permute.xlu0 %293 }
  0x9f   : > { %v296_v46 = vpop.permute.xlu1 %295  ;;  %v318_v47 = vsel %vm317_vm2, %v315_v43, %v294_v45 }
  0xa0   : > { %v319_v48 = vsel %vm317_vm2, %v316_v44, %v296_v46 }
  0xa2   : > { %v302_v49 = vpop.permute.xlu0 %301 }
  0xa3   : > { %v304_v50 = vpop.permute.xlu1 %303  ;;  %v321_v51 = vsel %vm320_vm3, %v318_v47, %v302_v49 }
  0xa4   : > { %v322_v52 = vsel %vm320_vm3, %v319_v48, %v304_v50  ;;  %v324_v53 = vsel %vm323_vm4, %v321_v51, %v310_v32 }
  0xa5   : > { %v325_v54 = vsel %vm323_vm4, %v322_v52, %v312_v38  ;;  %1563 = vmatprep.mubr.msk.f32.mxu0 %vm336_vm5, %v324_v53 }
  0xa6   : > { %v839_v55 = vpop.permute.xlu0 %838  ;;  %1564 = vmatmul.mubr.msk.f32.vlgmr.msra.gmra.mxu0 %vm336_vm5, %v325_v54 }
  0xa7   : > { %v841_v56 = vpop.permute.xlu1 %840  ;;  %v858_v57 = vsel %vm264_vm0, %v1105_v24, %v839_v55  ;;  %1576 = vmatpush3.msk.msra.mxu0 %vm669_vm6, %v661_v20 }
  0xa8   : > { %v859_v58 = vsel %vm264_vm0, %v477_v22, %v841_v56  ;;  %1585 = vmatprep.subr.msk.mxu0 %vm343_vm1, %v1880_v21  ;;  %v476_v22 = vld [vmem:[%s2024_s3] sm:$0x3] }
  0xa9   : > { %1580 = vmatprep.subr.msk.mxu1 %vm669_vm6, %v476_v22 }
  0xaa   : > { %v847_v59 = vpop.permute.xlu0 %846  ;;  %1581 = vmatpush3.msk.msra.mxu1 %vm669_vm6, %v476_v22 }
  0xab   : > { %v849_v60 = vpop.permute.xlu1 %848  ;;  %v860_v61 = vsel %vm317_vm2, %v858_v57, %v847_v59 }
  0xac   : > { %v861_v62 = vsel %vm317_vm2, %v859_v58, %v849_v60 }
  0xae   : > { %v853_v63 = vpop.permute.xlu0 %852 }
  0xaf   : > { %v855_v0 = vpop.permute.xlu1 %854  ;;  %v862_v1 = vsel %vm320_vm3, %v860_v61, %v853_v63 }
  0xb0   : > { %v863_v2 = vsel %vm320_vm3, %v861_v62, %v855_v0  ;;  %v1857_v4 = vsel %vm323_vm4, %v862_v1, %v310_v32 }
  0xb1   : > { %v1854_v3 = vsel %vm323_vm4, %v863_v2, %v312_v38 }
  0xb2   : > { %v1109_v6 = vpop.permute.xlu0 %1108 }
  0xb3   : > { %v1111_v7 = vpop.permute.xlu1 %1110  ;;  %v1128_v8 = vsel %vm264_vm0, %v1103_v5, %v1109_v6 }
  0xb4   : > { %v1129_v9 = vsel %vm264_vm0, %v1816_v23, %v1111_v7  ;;  %v1488_v23 = vld [vmem:[%s2023_s2 + $0x1] ss:$0 sm:$0xff] }
  0xb6   : > { %v1117_v10 = vpop.permute.xlu0 %1116 }
  0xb7   : > { %v1119_v11 = vpop.permute.xlu1 %1118  ;;  %v1130_v12 = vsel %vm317_vm2, %v1128_v8, %v1117_v10 }
  0xb8   : > { %v1131_v13 = vsel %vm317_vm2, %v1129_v9, %v1119_v11 }
  0xba   : > { %v1123_v14 = vpop.permute.xlu0 %1122 }
  0xbb   : > { %v1125_v15 = vpop.permute.xlu1 %1124  ;;  %v1132_v16 = vsel %vm320_vm3, %v1130_v12, %v1123_v14 }
  0xbc   : > { %v1133_v17 = vsel %vm320_vm3, %v1131_v13, %v1125_v15  ;;  %v1870_v19 = vsel %vm323_vm4, %v1132_v16, %v310_v32 }
  0xbd   : > { %v1867_v18 = vsel %vm323_vm4, %v1133_v17, %v312_v38 }
 0x159   : > { %v1574_v24 = vpop.f32.mrf.mxu1 }
 0x15a   : > { %v1892_v25 = vadd.f32 %v1574_v24, %v1488_v23 }
 0x15b   : > { %v598_v26 = vpop.f32.mrf.mxu1 }
 0x15c   : > { %v1895_v27 = vmul.f32 0.70710677, %v1892_v25  ;;  %v1897_v28 = vadd.f32 %v1488_v23, %v598_v26 }
 0x15e   : > { %v616_v29 = vand.u32 2147483647, %v1895_v27  ;;  %v1901_v30 = vmul.f32 0.70710677, %v1897_v28  ;;  %vm612_vm7 = vcmp.ge.f32.partialorder %v1895_v27, 0.0 }
 0x160   : > { %v618_v31 = vmul.f32 0.3275911, %v616_v29  ;;  %v615_v32 = vand.u32 2147483647, %v1901_v30  ;;  %v644_v42 = vsub.f32 0.0, %v616_v29  ;;  %vm611_vm8 = vcmp.ge.f32.partialorder %v1901_v30, 0.0 }
 0x162   : > { %v620_v33 = vadd.f32 1.0, %v618_v31  ;;  %v617_v34 = vmul.f32 0.3275911, %v615_v32  ;;  %v643_v45 = vsub.f32 0.0, %v615_v32  ;;  %v646_v48 = vmul.f32 %v644_v42, %v616_v29 }
 0x163   : > { %v1704_v42 = vmov -1.0  }
 0x164   : > { %1643 = vrcp.f32 %v620_v33  ;;  %v619_v35 = vadd.f32 1.0, %v617_v34  ;;  %v645_v52 = vmul.f32 %v643_v45, %v615_v32  ;;  %v649_v55 = vmul.f32 1.442695, %v646_v48 }
 0x165   : > { %v613_v27 = vsel %vm611_vm8, 1.0, %v1704_v42 }
 0x166   : > { %v1565_v37 = vpop.f32.mrf.mxu0  ;;  %1645 = vrcp.f32 %v619_v35  ;;  %v647_v59 = vmul.f32 1.442695, %v645_v52 }
 0x167   : > { %v1907_v38 = vadd.f32 %v1565_v37, %v1480_v36 }
 0x168   : > { %v413_v39 = vpop.f32.mrf.mxu0 }
 0x169   : > { %v1910_v40 = vmul.f32 0.70710677, %v1907_v38  ;;  %v1912_v41 = vadd.f32 %v1480_v36, %v413_v39 }
 0x16b   : > { %v431_v43 = vand.u32 2147483647, %v1910_v40  ;;  %v1916_v44 = vmul.f32 0.70710677, %v1912_v41  ;;  %vm427_vm10 = vcmp.ge.f32.partialorder %v1910_v40, 0.0  ;;  %v1498_v40 = vld [vmem:[%s2022_s1 + $0x30] sm:$0xff] }
 0x16d   : > { %v433_v46 = vmul.f32 0.3275911, %v431_v43  ;;  %v430_v47 = vand.u32 2147483647, %v1916_v44  ;;  %v459_v62 = vsub.f32 0.0, %v431_v43  ;;  %vm426_vm11 = vcmp.ge.f32.partialorder %v1916_v44, 0.0 }
 0x16f   : > { %v435_v49 = vadd.f32 1.0, %v433_v46  ;;  %v432_v50 = vmul.f32 0.3275911, %v430_v47  ;;  %v458_v2 = vsub.f32 0.0, %v430_v47  ;;  %v461_v6 = vmul.f32 %v459_v62, %v431_v43 }
 0x170   : > { %v614_v43 = vsel %vm612_vm7, 1.0, %v1704_v42 }
 0x171   : > { %v1644_v51 = vpop.eup %1643  ;;  %1647 = vrcp.f32 %v435_v49  ;;  %v434_v53 = vadd.f32 1.0, %v432_v50  ;;  %v460_v11 = vmul.f32 %v458_v2, %v430_v47  ;;  %v464_v14 = vmul.f32 1.442695, %v461_v6 }
 0x172   : > { %v626_v54 = vmul.f32 1.0614054, %v1644_v51  ;;  %v429_v6 = vsel %vm427_vm10, 1.0, %v1704_v42 }
 0x173   : > { %v1646_v56 = vpop.eup %1645  ;;  %1649 = vrcp.f32 %v434_v53  ;;  %v462_v24 = vmul.f32 1.442695, %v460_v11  ;;  %v422_v11 = vmul.f32 0.5, %v1912_v41 }
 0x174   : > { %v628_v57 = vadd.f32 -1.4531521, %v626_v54  ;;  %v625_v58 = vmul.f32 1.0614054, %v1646_v56  ;;  %1651 = vpow2.f32 %v649_v55 }
 0x175   : > { %1653 = vpow2.f32 %v647_v59  ;;  %v608_v59 = vmul.f32 0.5, %v1892_v25 }
 0x176   : > { %v630_v60 = vmul.f32 %v1644_v51, %v628_v57  ;;  %v627_v61 = vadd.f32 -1.4531521, %v625_v58  ;;  %1655 = vpow2.f32 %v464_v14 }
 0x177   : > { %1657 = vpow2.f32 %v462_v24 }
 0x178   : > { %v632_v63 = vadd.f32 1.4214138, %v630_v60  ;;  %v629_v0 = vmul.f32 %v1646_v56, %v627_v61 }
 0x17a   : > { %v634_v1 = vmul.f32 %v1644_v51, %v632_v63  ;;  %v631_v5 = vadd.f32 1.4214138, %v629_v0 }
 0x17c   : > { %v636_v7 = vadd.f32 -0.28449672, %v634_v1  ;;  %v633_v8 = vmul.f32 %v1646_v56, %v631_v5 }
 0x17e   : > { %v1648_v9 = vpop.eup %1647  ;;  %v638_v10 = vmul.f32 %v1644_v51, %v636_v7  ;;  %v635_v12 = vadd.f32 -0.28449672, %v633_v8 }
 0x17f   : > { %v441_v13 = vmul.f32 1.0614054, %v1648_v9 }
 0x180   : > { %v640_v15 = vadd.f32 0.2548296, %v638_v10  ;;  %v1650_v16 = vpop.eup %1649  ;;  %v637_v17 = vmul.f32 %v1646_v56, %v635_v12  ;;  %v428_v10 = vsel %vm426_vm11, 1.0, %v1704_v42 }
 0x181   : > { %v443_v20 = vadd.f32 -1.4531521, %v441_v13  ;;  %v440_v23 = vmul.f32 1.0614054, %v1650_v16  ;;  %v1652_v26 = vpop.eup %1651  ;;  %v423_v13 = vmul.f32 0.5, %v1907_v38 }
 0x182   : > { %v642_v22 = vmul.f32 %v1644_v51, %v640_v15  ;;  %v639_v29 = vadd.f32 0.2548296, %v637_v17  ;;  %v1654_v36 = vpop.eup %1653  ;;  %v1016_v15 = vld [vmem:[%s2024_s3 + $0x4] sm:$0x3] }
 0x183   : > { %v445_v31 = vmul.f32 %v1648_v9, %v443_v20  ;;  %v442_v33 = vadd.f32 -1.4531521, %v440_v23  ;;  %v1656_v62 = vpop.eup %1655  ;;  %1594 = vmatprep.subr.msk.mxu1 %vm669_vm6, %v1016_v15 }
 0x184   : > { %v652_v32 = vmul.f32 %v1652_v26, %v642_v22  ;;  %v641_v34 = vmul.f32 %v1646_v56, %v639_v29  ;;  %v607_v56 = vmul.f32 0.5, %v1897_v28  ;;  %v1499_v28 = vld [vmem:[%s2022_s1 + $0x38] sm:$0xff]  ;;  %v1658_v25 = vpop.eup %1657 }
 0x185   : > { %v447_v35 = vadd.f32 1.4214138, %v445_v31  ;;  %v444_v39 = vmul.f32 %v1650_v16, %v442_v33 }
 0x186   : > { %v654_v37 = vsub.f32 1.0, %v652_v32  ;;  %v651_v45 = vmul.f32 %v1654_v36, %v641_v34 }
 0x187   : > { %v449_v46 = vmul.f32 %v1648_v9, %v447_v35  ;;  %v446_v48 = vadd.f32 1.4214138, %v444_v39 }
 0x188   : > { %v656_v47 = vmul.f32 %v654_v37, %v614_v43  ;;  %v653_v49 = vsub.f32 1.0, %v651_v45 }
 0x189   : > { %v451_v50 = vadd.f32 -0.28449672, %v449_v46  ;;  %v448_v51 = vmul.f32 %v1650_v16, %v446_v48 }
 0x18a   : > { %v655_v52 = vmul.f32 %v653_v49, %v613_v27  ;;  %v658_v54 = vadd.f32 1.0, %v656_v47 }
 0x18b   : > { %v453_v53 = vmul.f32 %v1648_v9, %v451_v50  ;;  %v450_v55 = vadd.f32 -0.28449672, %v448_v51 }
 0x18c   : > { %v657_v57 = vadd.f32 1.0, %v655_v52  ;;  %v660_v63 = vmul.f32 %v658_v54, %v608_v59 }
 0x18d   : > { %v455_v58 = vadd.f32 0.2548296, %v453_v53  ;;  %v452_v30 = vmul.f32 %v1650_v16, %v450_v55 }
 0x18e   : > { %v659_v60 = vmul.f32 %v657_v57, %v607_v56 }
 0x18f   : > { %v457_v61 = vmul.f32 %v1648_v9, %v455_v58  ;;  %v454_v0 = vadd.f32 0.2548296, %v452_v30 }
 0x190   : > { %1577 = vmatprep.mubr.msk.f32.mxu0 %vm662_vm9, %v659_v60 }
 0x191   : > { %v467_v1 = vmul.f32 %v1656_v62, %v457_v61  ;;  %v456_v2 = vmul.f32 %v1650_v16, %v454_v0  ;;  %1578 = vmatmul.mubr.msk.f32.vlgmr.msra.gmra.mxu0 %vm662_vm9, %v660_v63  ;;  %v1502_v16 = vld [vmem:[%s2023_s2 + $0x2] ss:$0 sm:$0xff] }
 0x192   : > { %1586 = vmatpush3.msk.msra.mxu0 %vm343_vm1, %v1880_v21  ;;  %1591 = vmatprep.mubr.msk.f32.mxu0 %vm336_vm5, %v1857_v4 }
 0x193   : > { %v469_v5 = vsub.f32 1.0, %v467_v1  ;;  %v466_v7 = vmul.f32 %v1658_v25, %v456_v2  ;;  %1587 = vmatprep.subr.mxu0 %v1499_v28 }
 0x194   : > { %1588 = vmatpush3.msra.mxu0 %v1499_v28 }
 0x195   : > { %v471_v8 = vmul.f32 %v469_v5, %v429_v6  ;;  %v468_v9 = vsub.f32 1.0, %v466_v7  ;;  %1589 = vmatprep.subr.mxu0 %v1498_v40 }
 0x196   : > { %1590 = vmatpush3.msra.mxu0 %v1498_v40 }
 0x197   : > { %v470_v21 = vmul.f32 %v468_v9, %v428_v10  ;;  %1592 = vmatmul.mubr.msk.f32.vlgmr.msra.gmra.mxu0 %vm336_vm5, %v1854_v3  ;;  %v473_v4 = vadd.f32 1.0, %v471_v8  ;;  %v1955_v3 = vld [vmem:[%s2022_s1 + $0x58] sm:$0xf] }
 0x199   : > { %v472_v12 = vadd.f32 1.0, %v470_v21  ;;  %v475_v14 = vmul.f32 %v473_v4, %v423_v13 }
 0x19b   : > { %v474_v44 = vmul.f32 %v472_v12, %v422_v11 }
 0x19d   : > { %1582 = vmatprep.mubr.msk.f32.mxu1 %vm662_vm9, %v474_v44 }
 0x19e   : > { %1583 = vmatmul.mubr.msk.f32.vlgmr.msra.gmra.mxu1 %vm662_vm9, %v475_v14 }
 0x19f   : > { %1595 = vmatpush3.msk.msra.mxu1 %vm669_vm6, %v1016_v15  ;;  %v1510_v15 = vld [vmem:[%s2022_s1 + $0x50] sm:$0xff] }
 0x1a0   : > { %1599 = vmatprep.subr.msk.mxu1 %vm343_vm1, %v1955_v3 }
 0x251   : > { %v1579_v38 = vpop.f32.mrf.mxu0 }
 0x253   : > { %v1959_v41 = vpop.f32.mrf.mxu0 }
 0x257   : > { %v1593_v17 = vpop.f32.mrf.mxu0 }
 0x258   : > { %v959_v20 = vadd.f32 %v1593_v17, %v1502_v16 }
 0x259   : > { %v953_v22 = vpop.f32.mrf.mxu0 }
 0x25a   : > { %v965_v23 = vmul.f32 0.70710677, %v959_v20  ;;  %v954_v24 = vadd.f32 %v1502_v16, %v953_v22  ;;  %v963_v13 = vmul.f32 0.5, %v959_v20  ;;  %v1286_v16 = vld [vmem:[%s2024_s3 + $0x6] sm:$0x3] }
 0x25b   : > { %1608 = vmatprep.subr.msk.mxu0 %vm669_vm6, %v1286_v16 }
 0x25c   : > { %v971_v26 = vand.u32 2147483647, %v965_v23  ;;  %v964_v29 = vmul.f32 0.70710677, %v954_v24  ;;  %vm967_vm12 = vcmp.ge.f32.partialorder %v965_v23, 0.0  ;;  %v962_v11 = vmul.f32 0.5, %v954_v24  ;;  %1609 = vmatpush3.msk.msra.mxu0 %vm669_vm6, %v1286_v16 }
 0x25d   : > { %v969_v6 = vsel %vm967_vm12, 1.0, %v1704_v42  ;;  %v1520_v16 = vld [vmem:[%s2025_s4] ss:$0 sm:$0xff] }
 0x25e   : > { %v973_v31 = vmul.f32 0.3275911, %v971_v26  ;;  %v970_v32 = vand.u32 2147483647, %v964_v29  ;;  %v1584_v33 = vpop.f32.mrf.mxu1  ;;  %v999_v39 = vsub.f32 0.0, %v971_v26  ;;  %vm966_vm13 = vcmp.ge.f32.partialorder %v964_v29, 0.0 }
 0x25f   : > { %v1964_v34 = vadd.f32 %v1584_v33, %v1579_v38  ;;  %v968_v10 = vsel %vm966_vm13, 1.0, %v1704_v42  ;;  %v1509_v38 = vld [vmem:[%s2022_s1 + $0x48] sm:$0xff] }
 0x260   : > { %v975_v35 = vadd.f32 1.0, %v973_v31  ;;  %v972_v36 = vmul.f32 0.3275911, %v970_v32  ;;  %v998_v43 = vsub.f32 0.0, %v970_v32  ;;  %v1001_v45 = vmul.f32 %v999_v39, %v971_v26 }
 0x262   : > { %1659 = vrcp.f32 %v975_v35  ;;  %v974_v37 = vadd.f32 1.0, %v972_v36  ;;  %v1000_v47 = vmul.f32 %v998_v43, %v970_v32  ;;  %v1004_v49 = vmul.f32 1.442695, %v1001_v45 }
 0x264   : > { %1661 = vrcp.f32 %v974_v37  ;;  %v1002_v52 = vmul.f32 1.442695, %v1000_v47 }
 0x265   : > { %1663 = vpow2.f32 %v1004_v49 }
 0x266   : > { %1665 = vpow2.f32 %v1002_v52 }
 0x26f   : > { %v1660_v46 = vpop.eup %1659 }
 0x270   : > { %v981_v48 = vmul.f32 1.0614054, %v1660_v46 }
 0x271   : > { %v1662_v50 = vpop.eup %1661 }
 0x272   : > { %v983_v27 = vadd.f32 -1.4531521, %v981_v48  ;;  %v980_v51 = vmul.f32 1.0614054, %v1662_v50  ;;  %v1664_v1 = vpop.eup %1663 }
 0x273   : > { %v1666_v5 = vpop.eup %1665 }
 0x274   : > { %v985_v53 = vmul.f32 %v1660_v46, %v983_v27  ;;  %v982_v54 = vadd.f32 -1.4531521, %v980_v51 }
 0x276   : > { %v987_v55 = vadd.f32 1.4214138, %v985_v53  ;;  %v984_v56 = vmul.f32 %v1662_v50, %v982_v54 }
 0x278   : > { %v989_v57 = vmul.f32 %v1660_v46, %v987_v55  ;;  %v986_v58 = vadd.f32 1.4214138, %v984_v56 }
 0x27a   : > { %v991_v59 = vadd.f32 -0.28449672, %v989_v57  ;;  %v988_v30 = vmul.f32 %v1662_v50, %v986_v58 }
 0x27c   : > { %v993_v60 = vmul.f32 %v1660_v46, %v991_v59  ;;  %v990_v61 = vadd.f32 -0.28449672, %v988_v30 }
 0x27e   : > { %v995_v62 = vadd.f32 0.2548296, %v993_v60  ;;  %v992_v63 = vmul.f32 %v1662_v50, %v990_v61 }
 0x280   : > { %v997_v0 = vmul.f32 %v1660_v46, %v995_v62  ;;  %v994_v28 = vadd.f32 0.2548296, %v992_v63 }
 0x282   : > { %v1007_v2 = vmul.f32 %v1664_v1, %v997_v0  ;;  %v996_v25 = vmul.f32 %v1662_v50, %v994_v28 }
 0x284   : > { %v1009_v40 = vsub.f32 1.0, %v1007_v2  ;;  %v1006_v7 = vmul.f32 %v1666_v5, %v996_v25 }
 0x286   : > { %v1011_v8 = vmul.f32 %v1009_v40, %v969_v6  ;;  %v1008_v9 = vsub.f32 1.0, %v1006_v7 }
 0x288   : > { %v1010_v21 = vmul.f32 %v1008_v9, %v968_v10  ;;  %v1013_v4 = vadd.f32 1.0, %v1011_v8 }
 0x28a   : > { %v1012_v12 = vadd.f32 1.0, %v1010_v21  ;;  %v1015_v14 = vmul.f32 %v1013_v4, %v963_v13 }
 0x28c   : > { %v1014_v44 = vmul.f32 %v1012_v12, %v962_v11 }
 0x28e   : > { %1596 = vmatprep.mubr.msk.f32.mxu1 %vm662_vm9, %v1014_v44 }
 0x28f   : > { %1597 = vmatmul.mubr.msk.f32.vlgmr.msra.gmra.mxu1 %vm662_vm9, %v1015_v14 }
 0x290   : > { %1600 = vmatpush3.msk.msra.mxu1 %vm343_vm1, %v1955_v3  ;;  %1605 = vmatprep.mubr.msk.f32.mxu1 %vm336_vm5, %v1870_v19  ;;  %v823_v19 = vpop.f32.mrf.mxu1 }
 0x291   : > { %1601 = vmatprep.subr.mxu1 %v1510_v15  ;;  %v824_v17 = vadd.f32 %v823_v19, %v1959_v41 }
 0x292   : > { %1602 = vmatpush3.msra.mxu1 %v1510_v15 }
 0x293   : > { %1603 = vmatprep.subr.mxu1 %v1509_v38 }
 0x294   : > { %1604 = vmatpush3.msra.mxu1 %v1509_v38 }
 0x295   : > { %1606 = vmatmul.mubr.msk.f32.vlgmr.msra.gmra.mxu1 %vm336_vm5, %v1867_v18  ;;  %v1513_v18 = vld [vmem:[%s2023_s2 + $0x3] ss:$0 sm:$0xff] }
 0x34f   : > { %v1598_v3 = vpop.f32.mrf.mxu1 }
 0x350   : > { %v1989_v20 = vadd.f32 %v1598_v3, %v1964_v34 }
 0x351   : > { %v1092_v22 = vpop.f32.mrf.mxu1 }
 0x352   : > { %v1991_v23 = vadd.f32 %v1092_v22, %v824_v17 }
 0x355   : > { %v1607_v24 = vpop.f32.mrf.mxu1 }
 0x356   : > { %v1229_v26 = vadd.f32 %v1607_v24, %v1513_v18 }
 0x357   : > { %v1223_v29 = vpop.f32.mrf.mxu1 }
 0x358   : > { %v1235_v31 = vmul.f32 0.70710677, %v1229_v26  ;;  %v1224_v32 = vadd.f32 %v1513_v18, %v1223_v29  ;;  %v1233_v44 = vmul.f32 0.5, %v1229_v26 }
 0x35a   : > { %v1241_v33 = vand.u32 2147483647, %v1235_v31  ;;  %v1234_v35 = vmul.f32 0.70710677, %v1224_v32  ;;  %vm1237_vm14 = vcmp.ge.f32.partialorder %v1235_v31, 0.0  ;;  %v1232_v12 = vmul.f32 0.5, %v1224_v32 }
 0x35b   : > { %v1239_v7 = vsel %vm1237_vm14, 1.0, %v1704_v42 }
 0x35c   : > { %v1243_v36 = vmul.f32 0.3275911, %v1241_v33  ;;  %v1240_v37 = vand.u32 2147483647, %v1234_v35  ;;  %v1269_v43 = vsub.f32 0.0, %v1241_v33  ;;  %vm1236_vm15 = vcmp.ge.f32.partialorder %v1234_v35, 0.0 }
 0x35d   : > { %v1238_v21 = vsel %vm1236_vm15, 1.0, %v1704_v42 }
 0x35e   : > { %v1245_v41 = vadd.f32 1.0, %v1243_v36  ;;  %v1242_v39 = vmul.f32 0.3275911, %v1240_v37  ;;  %v1268_v45 = vsub.f32 0.0, %v1240_v37  ;;  %v1271_v46 = vmul.f32 %v1269_v43, %v1241_v33 }
 0x360   : > { %1667 = vrcp.f32 %v1245_v41  ;;  %v1244_v34 = vadd.f32 1.0, %v1242_v39  ;;  %v1270_v48 = vmul.f32 %v1268_v45, %v1240_v37  ;;  %v1274_v50 = vmul.f32 1.442695, %v1271_v46 }
 0x362   : > { %1669 = vrcp.f32 %v1244_v34  ;;  %v1272_v53 = vmul.f32 1.442695, %v1270_v48 }
 0x363   : > { %1671 = vpow2.f32 %v1274_v50 }
 0x364   : > { %1673 = vpow2.f32 %v1272_v53 }
 0x36d   : > { %v1668_v47 = vpop.eup %1667 }
 0x36e   : > { %v1251_v49 = vmul.f32 1.0614054, %v1668_v47 }
 0x36f   : > { %v1670_v27 = vpop.eup %1669 }
 0x370   : > { %v1253_v51 = vadd.f32 -1.4531521, %v1251_v49  ;;  %v1250_v52 = vmul.f32 1.0614054, %v1670_v27  ;;  %v1672_v28 = vpop.eup %1671 }
 0x371   : > { %v1674_v40 = vpop.eup %1673 }
 0x372   : > { %v1255_v54 = vmul.f32 %v1668_v47, %v1253_v51  ;;  %v1252_v55 = vadd.f32 -1.4531521, %v1250_v52 }
 0x374   : > { %v1257_v56 = vadd.f32 1.4214138, %v1255_v54  ;;  %v1254_v57 = vmul.f32 %v1670_v27, %v1252_v55 }
 0x376   : > { %v1259_v58 = vmul.f32 %v1668_v47, %v1257_v56  ;;  %v1256_v59 = vadd.f32 1.4214138, %v1254_v57 }
 0x378   : > { %v1261_v30 = vadd.f32 -0.28449672, %v1259_v58  ;;  %v1258_v60 = vmul.f32 %v1670_v27, %v1256_v59 }
 0x37a   : > { %v1263_v61 = vmul.f32 %v1668_v47, %v1261_v30  ;;  %v1260_v62 = vadd.f32 -0.28449672, %v1258_v60 }
 0x37c   : > { %v1265_v63 = vadd.f32 0.2548296, %v1263_v61  ;;  %v1262_v0 = vmul.f32 %v1670_v27, %v1260_v62 }
 0x37e   : > { %v1267_v1 = vmul.f32 %v1668_v47, %v1265_v63  ;;  %v1264_v2 = vadd.f32 0.2548296, %v1262_v0 }
 0x380   : > { %v1277_v25 = vmul.f32 %v1672_v28, %v1267_v1  ;;  %v1266_v5 = vmul.f32 %v1670_v27, %v1264_v2 }
 0x382   : > { %v1279_v6 = vsub.f32 1.0, %v1277_v25  ;;  %v1276_v8 = vmul.f32 %v1674_v40, %v1266_v5 }
 0x384   : > { %v1281_v9 = vmul.f32 %v1279_v6, %v1239_v7  ;;  %v1278_v10 = vsub.f32 1.0, %v1276_v8 }
 0x386   : > { %v1280_v4 = vmul.f32 %v1278_v10, %v1238_v21  ;;  %v1283_v11 = vadd.f32 1.0, %v1281_v9 }
 0x388   : > { %v1282_v13 = vadd.f32 1.0, %v1280_v4  ;;  %v1285_v15 = vmul.f32 %v1283_v11, %v1233_v44 }
 0x38a   : > { %v1284_v14 = vmul.f32 %v1282_v13, %v1232_v12 }
 0x38c   : > { %1610 = vmatprep.mubr.msk.f32.mxu0 %vm662_vm9, %v1284_v14 }
 0x38d   : > { %1611 = vmatmul.mubr.msk.f32.vlgmr.msra.gmra.mxu0 %vm662_vm9, %v1285_v15 }
 0x44d   : > { %v1612_v38 = vpop.f32.mrf.mxu0 }
 0x44e   : > { %v1372_v19 = vadd.f32 %v1612_v38, %v1989_v20 }
 0x44f   : > { %v1362_v42 = vpop.f32.mrf.mxu0 }
 0x450   : > { %v1381_v3 = vadd.f32 %v1520_v16, %v1372_v19  ;;  %v1371_v17 = vadd.f32 %v1362_v42, %v1991_v23 }
 0x452   : > { %1383 = vst.msk [vmem:[%s262_s9 + $0x8] sm:$0xff] %vm317_vm2, %v1381_v3  ;;  %v1380_v22 = vadd.f32 %v1520_v16, %v1371_v17 }
 0x454   : > { %1382 = vst.msk [vmem:[%s262_s9] sm:$0xff] %vm317_vm2, %v1380_v22 }
 0x455 PF: > { %s15_s20 = sadd.s32 1, %s1697_s20   ;;  %s2027_s18 = smov %s1693_s19 }
 0x456   : > { %p12_p5 = scmp.ge.s32.totalorder %s15_s20, 4   ;;  %s2028_s19 = smov %s2030_s21 }
 0x458   :  { %14 = sbr.rel (!%p12_p5) target bundleno = 2 (0x2), region = 76 }

</bundles_post_ra>
